<compile_context>
chip_gen: v5e
topology: v5e:2x2
jax: 0.10.0
libtpu: 0.0.40
codegen_flags: <defaults>
</compile_context>

<pallas_src>
import functools

import jax
import jax.numpy as jnp
from jax.experimental import pallas as pl
from jax.experimental.pallas import tpu as pltpu


# ----------------------------- VMEM budgeting ------------------------------

def _vmem_capacity_bytes():
    """Physical VMEM per TensorCore; conservative 64 MiB (v7x) if unknown."""
    try:
        info = pltpu.get_tpu_info()
        for name in ("vmem_capacity_bytes", "vmem_bytes", "vmem_size_bytes"):
            v = getattr(info, name, None)
            if v:
                return int(v)
    except Exception:
        pass
    return 64 << 20


def _budgets(itemsize, max_tile_bytes=None):
    cap = _vmem_capacity_bytes()
    # Total resident footprint per grid step: 2x double-buffered input,
    # 2x double-buffered output, plus ~3 full-tile f32 temporaries in the body.
    tile_budget = min(cap // 3, 40 << 20)   # ~40 MiB on v5e/v6e, ~21 MiB on v7x
    if max_tile_bytes is not None:
        tile_budget = int(max_tile_bytes)
    vmem_limit = int(min(cap, tile_budget + (16 << 20)))
    per_elem = 4 * itemsize + 3 * 4         # dbl-buffered in+out + f32 temps
    return tile_budget, vmem_limit, per_elem


def _choose_row_block(rows, cols, per_elem, tile_budget):
    per_row = cols * per_elem
    tb = max(8, int(tile_budget // max(1, per_row)) // 8 * 8)
    if rows > 8:
        # Keep at least 2 grid steps so both v7x TensorCores get work.
        half = -(-rows // 2)                # ceil(rows/2)
        half = -(-half // 8) * 8            # round up to a multiple of 8
        tb = min(tb, half)
    if tb >= rows:
        tb = rows
    return tb


# -------------------------------- kernels -----------------------------------

def _cam_kernel(x_ref, o_ref, *, w, a, b, eps):
    # x_ref / o_ref: (TB, H*W); each row is one (n, c) spatial slab.
    x = x_ref[...]
    # min/max are exact in the native dtype (bf16 VALU exists on v6e/v7x);
    # avoids materializing a full-tile f32 copy before the reductions.
    mn = jnp.min(x, axis=-1, keepdims=True).astype(jnp.float32)
    mx = jnp.max(x, axis=-1, keepdims=True).astype(jnp.float32)
    z = x.astype(jnp.float32)
    rng_inv = 1.0 / (mx - mn + eps)         # one exact divide per row
    hw = 0.5 * w
    scale = (hw * (b - a)) * rng_inv
    # sigmoid(t) == 0.5 * tanh(0.5 * t) + 0.5  (single EUP tanh, fewer VPU ops)
    o_ref[...] = (0.5 * jnp.tanh(hw * a + scale * (z - mn)) + 0.5).astype(o_ref.dtype)


def _rowminmax_kernel(x_ref, mn_ref, mx_ref, *, cols, tbc, mask_tail):
    # Pass 1 of the column-tiled path: running per-row min/max over col tiles.
    j = pl.program_id(1)
    xv = x_ref[...].astype(jnp.float32)
    if mask_tail:
        idx = j * tbc + jax.lax.broadcasted_iota(jnp.int32, xv.shape, 1)
        valid = idx < cols
        bmn = jnp.min(jnp.where(valid, xv, jnp.inf), axis=-1, keepdims=True)
        bmx = jnp.max(jnp.where(valid, xv, -jnp.inf), axis=-1, keepdims=True)
    else:
        bmn = jnp.min(xv, axis=-1, keepdims=True)
        bmx = jnp.max(xv, axis=-1, keepdims=True)

    @pl.when(j == 0)
    def _():
        mn_ref[...] = bmn
        mx_ref[...] = bmx

    @pl.when(j > 0)
    def _():
        mn_ref[...] = jnp.minimum(mn_ref[...], bmn)
        mx_ref[...] = jnp.maximum(mx_ref[...], bmx)


def _cam_apply_kernel(x_ref, mn_ref, mx_ref, o_ref, *, w, a, b, eps):
    # Pass 2 of the column-tiled path: elementwise transform with given min/max.
    z = x_ref[...].astype(jnp.float32)
    mn = mn_ref[...]
    mx = mx_ref[...]
    rng_inv = 1.0 / (mx - mn + eps)
    hw = 0.5 * w
    scale = (hw * (b - a)) * rng_inv
    o_ref[...] = (0.5 * jnp.tanh(hw * a + scale * (z - mn)) + 0.5).astype(o_ref.dtype)


# -------------------------------- wrappers -----------------------------------

def cam_standardizer(x, *, w=5.0, a=-1.0, b=1.0, eps=1e-08, max_tile_bytes=None):
    """Pallas equivalent of CamStandardizer.forward_tensor. x: (N, C, H, W)."""
    assert x.ndim == 4
    N, C, H, W = x.shape
    rows, cols = N * C, H * W
    x2 = x.reshape(rows, cols)              # free for contiguous NCHW
    itemsize = x.dtype.itemsize
    tile_budget, vmem_limit, per_elem = _budgets(itemsize, max_tile_bytes)

    cost = pl.CostEstimate(flops=10 * rows * cols,
                           transcendentals=rows * cols,
                           bytes_accessed=2 * rows * cols * itemsize)

    # ---- single-pass path: whole rows fit in the VMEM budget ----
    if 8 * cols * per_elem <= tile_budget:
        tb = _choose_row_block(rows, cols, per_elem, tile_budget)
        # TODO(synk): for tiny H*W (e.g. 7x7=49) pack several spatial slabs per
        # 128-lane row with a segmented min/max to avoid masked lane stores.
        out2 = pl.pallas_call(
            functools.partial(_cam_kernel, w=w, a=a, b=b, eps=eps),
            out_shape=jax.ShapeDtypeStruct((rows, cols), x.dtype),
            grid=(pl.cdiv(rows, tb),),
            in_specs=[pl.BlockSpec((tb, cols), lambda i: (i, 0))],
            out_specs=pl.BlockSpec((tb, cols), lambda i: (i, 0)),
            compiler_params=pltpu.CompilerParams(
                dimension_semantics=("parallel",),
                vmem_limit_bytes=vmem_limit),
            cost_estimate=cost,
        )(x2)
        return out2.reshape(N, C, H, W)

    # ---- two-pass column-tiled fallback for very large H*W ----
    tbr = 8 if rows >= 8 else rows
    tbc = max(128, int(tile_budget // max(1, tbr * per_elem)) // 128 * 128)
    if tbc >= cols:
        tbc = cols
    mask_tail = (tbc != cols) and (cols % tbc != 0)
    grid = (pl.cdiv(rows, tbr), pl.cdiv(cols, tbc))

    mn, mx = pl.pallas_call(
        functools.partial(_rowminmax_kernel, cols=cols, tbc=tbc, mask_tail=mask_tail),
        out_shape=(jax.ShapeDtypeStruct((rows, 1), jnp.float32),
                   jax.ShapeDtypeStruct((rows, 1), jnp.float32)),
        grid=grid,
        in_specs=[pl.BlockSpec((tbr, tbc), lambda i, j: (i, j))],
        out_specs=(pl.BlockSpec((tbr, 1), lambda i, j: (i, 0)),
                   pl.BlockSpec((tbr, 1), lambda i, j: (i, 0))),
        compiler_params=pltpu.CompilerParams(
            dimension_semantics=("parallel", "arbitrary"),
            vmem_limit_bytes=vmem_limit),
    )(x2)

    out2 = pl.pallas_call(
        functools.partial(_cam_apply_kernel, w=w, a=a, b=b, eps=eps),
        out_shape=jax.ShapeDtypeStruct((rows, cols), x.dtype),
        grid=grid,
        in_specs=[pl.BlockSpec((tbr, tbc), lambda i, j: (i, j)),
                  pl.BlockSpec((tbr, 1), lambda i, j: (i, 0)),
                  pl.BlockSpec((tbr, 1), lambda i, j: (i, 0))],
        out_specs=pl.BlockSpec((tbr, tbc), lambda i, j: (i, j)),
        compiler_params=pltpu.CompilerParams(
            dimension_semantics=("parallel", "parallel"),
            vmem_limit_bytes=vmem_limit),
        cost_estimate=cost,
    )(x2, mn, mx)
    return out2.reshape(N, C, H, W)


def cam_standardizer_list(xs, *, w=5.0, a=-1.0, b=1.0, eps=1e-08):
    """Pallas equivalent of CamStandardizer.forward_list."""
    assert isinstance(xs, list)
    return [cam_standardizer(xi, w=w, a=a, b=b, eps=eps) for xi in xs]


def cam_standardizer_ref(x, *, w=5.0, a=-1.0, b=1.0, eps=1e-08):
    """Pure-JAX reference for correctness checking."""
    c = b - a
    mn = jnp.min(x, axis=(2, 3), keepdims=True)
    mx = jnp.max(x, axis=(2, 3), keepdims=True)
    t = a + c * (x - mn) / (mx - mn + eps)
    return jax.nn.sigmoid(w * t)


if __name__ == "__main__":
    key = jax.random.PRNGKey(0)
    x = jax.random.normal(key, (2, 4, 16, 16), dtype=jnp.float32)

    out = jax.block_until_ready(cam_standardizer(x))
    ref = cam_standardizer_ref(x)
    assert out.shape == (2, 4, 16, 16)
    assert jnp.allclose(out, ref, atol=1e-5, rtol=1e-5)

    # List path (forward_list): same kernel per element.
    xs = [x, x * 2.0 + 1.0]
    outs = [jax.block_until_ready(o) for o in cam_standardizer_list(xs)]
    for xi, oi in zip(xs, outs):
        assert jnp.allclose(oi, cam_standardizer_ref(xi), atol=1e-5, rtol=1e-5)

    # Non-128-multiple H*W, plus a forced tiny tile budget to exercise the
    # two-pass column-tiled fallback (masked tail reduction).
    x_small = jax.random.normal(jax.random.PRNGKey(1), (2, 4, 14, 14), jnp.float32)
    out_a = jax.block_until_ready(cam_standardizer(x_small))
    out_b = jax.block_until_ready(cam_standardizer(x_small, max_tile_bytes=4096))
    ref_s = cam_standardizer_ref(x_small)
    assert jnp.allclose(out_a, ref_s, atol=1e-5, rtol=1e-5)
    assert jnp.allclose(out_b, ref_s, atol=1e-5, rtol=1e-5)

    print("KERNEL_OK")
</pallas_src>

<mosaic_0001>
module attributes {stable_mosaic.version = 11 : i64} {
  func.func @_cam_kernel(%arg0: i32, %arg1: memref<8x256xf32, #tpu.memory_space<vmem>>, %arg2: memref<8x256xf32, #tpu.memory_space<vmem>>) attributes {dimension_semantics = [#tpu.dimension_semantics<parallel>], iteration_bounds = array<i64: 1>, scalar_prefetch = 0 : i64, scratch_operands = 0 : i64, tpu.core_type = #tpu.core_type<tc>, window_params = [{transform_indices = @transform_0, window_bounds = array<i64: 8, 256>}, {transform_indices = @transform_1, window_bounds = array<i64: 8, 256>}]} {
    %c0 = arith.constant 0 : index
    %c0_0 = arith.constant 0 : index
    %0 = vector.load %arg1[%c0, %c0_0] : memref<8x256xf32, #tpu.memory_space<vmem>>, vector<8x256xf32>
    %cst = arith.constant dense<0x7F800000> : vector<8xf32>
    %1 = vector.multi_reduction <minimumf>, %0, %cst [1] : vector<8x256xf32> to vector<8xf32>
    %2 = vector.shape_cast %1 : vector<8xf32> to vector<8x1xf32>
    %cst_1 = arith.constant dense<0xFF800000> : vector<8xf32>
    %3 = vector.multi_reduction <maximumf>, %0, %cst_1 [1] : vector<8x256xf32> to vector<8xf32>
    %4 = vector.shape_cast %3 : vector<8xf32> to vector<8x1xf32>
    %5 = arith.subf %4, %2 : vector<8x1xf32>
    %cst_2 = arith.constant 9.99999993E-9 : f32
    %6 = vector.broadcast %cst_2 : f32 to vector<8x1xf32>
    %7 = arith.addf %5, %6 : vector<8x1xf32>
    %cst_3 = arith.constant 1.000000e+00 : f32
    %8 = vector.broadcast %cst_3 : f32 to vector<8x1xf32>
    %9 = arith.divf %8, %7 : vector<8x1xf32>
    %cst_4 = arith.constant 5.000000e+00 : f32
    %10 = vector.broadcast %cst_4 : f32 to vector<8x1xf32>
    %11 = arith.mulf %10, %9 : vector<8x1xf32>
    %12 = vector.broadcast %2 : vector<8x1xf32> to vector<8x256xf32>
    %13 = arith.subf %0, %12 : vector<8x256xf32>
    %14 = vector.broadcast %11 : vector<8x1xf32> to vector<8x256xf32>
    %15 = arith.mulf %14, %13 : vector<8x256xf32>
    %cst_5 = arith.constant -2.500000e+00 : f32
    %16 = vector.broadcast %cst_5 : f32 to vector<8x256xf32>
    %17 = arith.addf %16, %15 : vector<8x256xf32>
    %18 = math.tanh %17 : vector<8x256xf32>
    %cst_6 = arith.constant 5.000000e-01 : f32
    %19 = vector.broadcast %cst_6 : f32 to vector<8x256xf32>
    %20 = arith.mulf %19, %18 : vector<8x256xf32>
    %cst_7 = arith.constant 5.000000e-01 : f32
    %21 = vector.broadcast %cst_7 : f32 to vector<8x256xf32>
    %22 = arith.addf %20, %21 : vector<8x256xf32>
    %c0_8 = arith.constant 0 : index
    %c0_9 = arith.constant 0 : index
    %23 = vector.load %arg2[%c0_8, %c0_9] : memref<8x256xf32, #tpu.memory_space<vmem>>, vector<8x256xf32>
    tpu.vector_store %arg2[%c0_8, %c0_9], %22 {strides = array<i32>} : memref<8x256xf32, #tpu.memory_space<vmem>>, vector<8x256xf32>,
    return
  }
  func.func @transform_0(%arg0: i32) -> (i32, i32) {
    %c0_i32 = arith.constant 0 : i32
    %c0_i32_0 = arith.constant 0 : i32
    return %arg0, %c0_i32 : i32, i32
  }
  func.func @transform_1(%arg0: i32) -> (i32, i32) {
    %c0_i32 = arith.constant 0 : i32
    %c0_i32_0 = arith.constant 0 : i32
    return %arg0, %c0_i32 : i32, i32
  }
}

</mosaic_0001>

<bundles_post_ra>
// kernel: tpu_custom_call.1
= control target key start
LH: loop header
LB: loop body
LE: loop exit
PB: predicated region body
PF: predicated region fallthrough
CT: control target
= control target key end

     0   :  { %6 = vsyncpa [#allocation3], 0  ;;  %s158_s0 = inlined_call_operand.hbm [shape: f32[8,256], index: 0, kind: input, shape index: {}]   ;;  %s159_s1 = inlined_call_operand.hbm [shape: f32[8,256], index: 1, kind: output, shape index: {}]  }
   0x1   :  { %7 = vsyncpa [#allocation4], 0  ;;  %s13_s8 = sshll.u32 %s158_s0, 4  ;;  %s140_s9 = smov [#allocation2]   ;;  %s14_s8 = int_to_ptr.hbm [resolvable:$true] %s13_s8 }
   0x2   :  { %s15_s10 = sshll.u32 %s140_s9, 4  ;;  %s16_s10 = int_to_ptr.vmem [resolvable:$true] %s15_s10 }
   0x3   :  { %18 = dma.hbm_to_vmem [thread:$0]  %s14_s8, 256, %s16_s10, [#allocation3]  }
   0x4   :  { %136 = dma.done.wait [#allocation3], 256  }
   0x5   :  { %137 = vsyncadd [#allocation3], 4294967040  ;;  %v23_v0 = vld [vmem:[#allocation2] sm:$0xff]  ;;  %v24_v1 = vld [vmem:[#allocation2 + $0x8] sm:$0xff]  ;;  %s141_s0 = smov [#allocation5]   ;;  %s70_s14 = sshll.u32 %s159_s1, 4  ;;  %s71_s14 = int_to_ptr.hbm [resolvable:$true] %s70_s14 }
   0x6   :  { %v25_v2 = vmin.f32 %v23_v0, %v24_v1  ;;  %v28_v3 = vmax.f32 %v23_v0, %v24_v1  ;;  %s68_s11 = sshll.u32 %s141_s0, 4  ;;  %s69_s11 = int_to_ptr.vmem [resolvable:$true] %s68_s11 }
   0x8   :  { %26 = vmin.xlane.f32.xlu0 %v25_v2 }
  0x10   :  { %29 = vmax.xlane.f32.xlu0 %v28_v3 }
  0x7b   :  { %v27_v4 = vpop.xlane.xlu0 %26 }
  0x7c   :  { %v49_v18 = vsub.f32 %v23_v0, %v27_v4  ;;  %v50_v19 = vsub.f32 %v24_v1, %v27_v4 }
  0x83   :  { %v30_v5 = vpop.xlane.xlu0 %29 }
  0x84   :  { %v31_v6 = vsub.f32 %v30_v5, %v27_v4 }
  0x86   :  { %v32_v7 = vadd.f32 1e-08, %v31_v6 }
  0x88   :  { %82 = vrcp.f32 %v32_v7  ;;  %v44_v11 = vand.u32 2147483648, %v32_v7  ;;  %v42_v13 = vand.u32 2147483647, %v32_v7  ;;  %vm38_vm1 = vweird.f32 %v32_v7 }
  0x8a   :  { %v45_v15 = vor.u32 1.1754944e-38, %v44_v11  ;;  %vm43_vm3 = vcmp.eq.f32.partialorder %v42_v13, 8.507059e+37 }
  0x8e   :  { %v83_v8 = vpop.eup %82 }
  0x8f   :  { %v34_v9 = vmul.f32 %v83_v8, %v32_v7  ;;  %vm39_vm0 = vweird.f32 %v83_v8 }
  0x90   :  { %vm40_vm2 = vmor %vm38_vm1, %vm39_vm0 }
  0x91   :  { %v35_v10 = vsub.f32 1.0, %v34_v9 }
  0x93   :  { %v36_v12 = vmul.f32 %v83_v8, %v35_v10 }
  0x95   :  { %v37_v14 = vadd.f32 %v83_v8, %v36_v12 }
  0x97   :  { %v41_v16 = vsel %vm40_vm2, %v83_v8, %v37_v14 }
  0x98   :  { %v46_v17 = vsel %vm43_vm3, %v45_v15, %v41_v16 }
  0x99   :  { %v48_v20 = vmul.f32 5.0, %v46_v17 }
  0x9b   :  { %v51_v21 = vmul.f32 %v49_v18, %v48_v20  ;;  %v52_v22 = vmul.f32 %v50_v19, %v48_v20 }
  0x9d   :  { %v53_v23 = vadd.f32 -2.5, %v51_v21  ;;  %v54_v24 = vadd.f32 -2.5, %v52_v22 }
  0x9f   :  { %84 = vtanh.f32 %v53_v23 }
  0xa0   :  { %86 = vtanh.f32 %v54_v24 }
  0xa5   :  { %v85_v25 = vpop.eup %84 }
  0xa6   :  { %v87_v26 = vpop.eup %86  ;;  %v57_v27 = vmul.f32 0.5, %v85_v25 }
  0xa7   :  { %v58_v28 = vmul.f32 0.5, %v87_v26 }
  0xa8   :  { %v59_v29 = vadd.f32 0.5, %v57_v27 }
  0xa9   :  { %v60_v30 = vadd.f32 0.5, %v58_v28 }
  0xaa   :  { %61 = vst [vmem:[#allocation5] sm:$0xff] %v59_v29 }
  0xab   :  { %62 = vst [vmem:[#allocation5 + $0x8] sm:$0xff] %v60_v30 }
  0xac   :  { %73 = dma.vmem_to_hbm [thread:$0]  %s69_s11, 256, %s71_s14, [#allocation4]  }
  0xad   :  { %138 = dma.done.wait [#allocation4], 256  }
  0xae   :  { %139 = vsyncadd [#allocation4], 4294967040 }
  0xaf   :  { %78 = vsyncpa [#allocation3], 1 }
  0xb0   :  { %79 = vsyncpa [#allocation4], 1 }

</bundles_post_ra>
